<compile_context>
chip_gen: v5e
topology: v5e:2x2
jax: 0.10.0
libtpu: 0.0.40
codegen_flags: <defaults>
</compile_context>

<pallas_src>
import math

import jax
import jax.numpy as jnp
from jax.experimental import pallas as pl
from jax.experimental.pallas import tpu as pltpu

BN_EPS = 1e-5


def model3_kernel(a_ref, x_ref, mt_ref, w1_ref, w23_ref, b_ref, wl1_ref, head_ref,
                  out_ref):
    A = a_ref[...]                       # [N, N]
    x = x_ref[...]                       # [N, F_IN]
    b_all = b_ref[...]                   # [3, H]   folded per-layer biases
    w23 = w23_ref[...]                   # [2H, 2H] stacked layer-2 / layer-3 fused weights
    H = b_ref.shape[1]

    def gconv_relu(x_in, w_cat, bias):
        # y = x @ [Wrel' | Wroot'];  h = A @ (x @ Wrel') + x @ Wroot' + b'
        y = jnp.dot(x_in, w_cat, preferred_element_type=jnp.float32)          # [N, 2H]
        h = (jnp.dot(A, y[:, :H], preferred_element_type=jnp.float32)
             + y[:, H:] + bias)
        return jnp.maximum(h, 0.0)

    h = gconv_relu(x, w1_ref[...], b_all[0:1, :])
    h = gconv_relu(h, w23[:H, :], b_all[1:2, :])
    h = gconv_relu(h, w23[H:, :], b_all[2:3, :])

    # global_max_pool: one vectorized masked max over nodes per graph.
    # (-1e30 sentinel: an empty graph would pool to -1e30; fine for static data.)
    mt = mt_ref[...]                                                           # [G, N]
    masked = jnp.where(mt[:, :, None] > 0.5, h[None, :, :], jnp.float32(-1e30))
    pooled = jnp.max(masked, axis=1)                                           # [G, H]

    # F.dropout(training=False) -> identity

    # head: lin1 -> relu -> lin2 -> relu   (lin2 done as lane reduce; weights packed)
    head = head_ref[...]                 # [3, 16]: row0 = bl1, row1 = wl2^T, row2[0] = bl2
    z = jnp.dot(pooled, wl1_ref[...], preferred_element_type=jnp.float32) + head[0:1, :]
    z = jnp.maximum(z, 0.0)                                                    # [G, 16]
    y = jnp.sum(z * head[1:2, :], axis=1, keepdims=True) + head[2:3, 0:1]      # [G, 1]
    y = jnp.maximum(y, 0.0)

    # lane-dense store; wrapper slices back to (G, 1)
    out_ref[...] = jnp.broadcast_to(y, out_ref.shape)


def _fold_bn_into_graphconv(w_rel, b_rel, w_root, gamma, beta, mean, var):
    s = gamma / jnp.sqrt(var + BN_EPS)                       # [1, H]
    w_cat = jnp.concatenate([w_rel * s, w_root * s], axis=1)  # [C_in, 2H]
    bias = (b_rel - mean) * s + beta                          # [1, H]
    return w_cat, bias


def model3_pallas(A, X, M, params):
    (wr1, br1, wo1, g1, be1, mu1, va1,
     wr2, br2, wo2, g2, be2, mu2, va2,
     wr3, br3, wo3, g3, be3, mu3, va3,
     wl1, bl1, wl2, bl2) = params

    N = A.shape[0]
    G = M.shape[1]
    H = wr1.shape[1]
    F16 = wl1.shape[1]

    # ---- host-side constant folding & operand packing (8 kernel operands) ----
    w1, b1 = _fold_bn_into_graphconv(wr1, br1, wo1, g1, be1, mu1, va1)  # [F_IN, 2H]
    w2, b2 = _fold_bn_into_graphconv(wr2, br2, wo2, g2, be2, mu2, va2)  # [H, 2H]
    w3, b3 = _fold_bn_into_graphconv(wr3, br3, wo3, g3, be3, mu3, va3)  # [H, 2H]

    w23 = jnp.concatenate([w2, w3], axis=0)                             # [2H, 2H]
    b_all = jnp.concatenate([b1, b2, b3], axis=0)                       # [3, H]
    m_t = M.T                                                           # [G, N]
    head = jnp.concatenate(
        [bl1,                                                            # [1, 16]
         wl2.T,                                                          # [1, 16]
         jnp.pad(bl2, ((0, 0), (0, F16 - bl2.shape[1])))], axis=0)       # [3, 16]

    ins = [A, X, m_t, w1, w23, b_all, wl1, head]

    # Guard the whole-array-in-VMEM assumption (v7x has only 64 MiB / TC).
    vmem_bytes = 4 * sum(int(a.size) for a in ins) + 4 * G * 128
    assert vmem_bytes < 32 * 1024 * 1024, (
        "working set too large for whole-array VMEM residency; tile A/h instead")

    vmem_spec = pl.BlockSpec(memory_space=pltpu.MemorySpace.VMEM)
    out = pl.pallas_call(
        model3_kernel,
        out_shape=jax.ShapeDtypeStruct((G, 128), jnp.float32),
        in_specs=[vmem_spec] * len(ins),
        out_specs=vmem_spec,
    )(*ins)
    return out[:, :1]


# ----------------------------- reference (pure JAX) -----------------------------
def model3_reference(A, X, M, params):
    (wr1, br1, wo1, g1, be1, mu1, va1,
     wr2, br2, wo2, g2, be2, mu2, va2,
     wr3, br3, wo3, g3, be3, mu3, va3,
     wl1, bl1, wl2, bl2) = params

    def layer(x, wr, br, wo, g, be, mu, va):
        h = (A @ x) @ wr + br + x @ wo
        h = g * (h - mu) / jnp.sqrt(va + BN_EPS) + be
        return jnp.maximum(h, 0.0)

    h = layer(X, wr1, br1, wo1, g1, be1, mu1, va1)
    h = layer(h, wr2, br2, wo2, g2, be2, mu2, va2)
    h = layer(h, wr3, br3, wo3, g3, be3, mu3, va3)
    masked = jnp.where(M.T[:, :, None] > 0.5, h[None, :, :], -1e30)  # [G, N, C]
    pooled = masked.max(axis=1)
    z = jnp.maximum(pooled @ wl1 + bl1, 0.0)
    return jnp.maximum(z @ wl2 + bl2, 0.0)


# ----------------------------- parameter init -----------------------------
def init_linear(key, fan_in, fan_out, bias=True):
    kw, kb = jax.random.split(key)
    bound = 1.0 / math.sqrt(fan_in)
    W = jax.random.uniform(kw, (fan_in, fan_out), jnp.float32, -bound, bound)
    if not bias:
        return W
    b = jax.random.uniform(kb, (1, fan_out), jnp.float32, -bound, bound)
    return W, b


def init_graphconv(key, c_in, c_out):
    k1, k2 = jax.random.split(key)
    w_rel, b_rel = init_linear(k1, c_in, c_out, bias=True)   # lin_rel (with bias)
    w_root = init_linear(k2, c_in, c_out, bias=False)        # lin_root (no bias)
    return w_rel, b_rel, w_root


def init_bn(key, c):
    k1, k2, k3, k4 = jax.random.split(key, 4)
    gamma = jax.random.uniform(k1, (1, c), jnp.float32, 0.5, 1.5)
    beta = jax.random.normal(k2, (1, c), jnp.float32) * 0.1
    mean = jax.random.normal(k3, (1, c), jnp.float32) * 0.1
    var = jax.random.uniform(k4, (1, c), jnp.float32, 0.5, 1.5)
    return gamma, beta, mean, var


if __name__ == "__main__":
    seed_model = 0
    key = jax.random.PRNGKey(seed_model)

    # small problem sizes
    N = 16          # total nodes
    F_IN = 8        # features_channels
    H = 32          # hidden_channels
    E = 40          # edges
    G = 2           # graphs in the batch

    (k_x, k_src, k_dst, k_w,
     k_c1, k_c2, k_c3, k_b1, k_b2, k_b3, k_l1, k_l2) = jax.random.split(key, 12)

    # inputs (node features, edge_index, edge_attr = scalar edge weights, batch)
    X = jax.random.normal(k_x, (N, F_IN), jnp.float32)
    src = jax.random.randint(k_src, (E,), 0, N, jnp.int32)
    dst = jax.random.randint(k_dst, (E,), 0, N, jnp.int32)
    edge_index = jnp.stack([src, dst], axis=0)                 # [2, E]
    edge_attr = jax.random.uniform(k_w, (E,), jnp.float32, 0.1, 1.0)
    batch = jnp.concatenate([jnp.zeros(N // 2, jnp.int32),
                             jnp.ones(N - N // 2, jnp.int32)])  # [N]

    # glue: dense weighted adjacency (aggr='add', flow source->target)
    A = jnp.zeros((N, N), jnp.float32).at[edge_index[1], edge_index[0]].add(edge_attr)
    # glue: one-hot node->graph matrix for global_max_pool, layout [N, G]
    M = (batch[:, None] == jnp.arange(G)[None, :]).astype(jnp.float32)

    # parameters
    wr1, br1, wo1 = init_graphconv(k_c1, F_IN, H)
    wr2, br2, wo2 = init_graphconv(k_c2, H, H)
    wr3, br3, wo3 = init_graphconv(k_c3, H, H)
    g1, be1, mu1, va1 = init_bn(k_b1, H)
    g2, be2, mu2, va2 = init_bn(k_b2, H)
    g3, be3, mu3, va3 = init_bn(k_b3, H)
    wl1, bl1 = init_linear(k_l1, H, 16)
    wl2, bl2 = init_linear(k_l2, 16, 1)

    params = (wr1, br1, wo1, g1, be1, mu1, va1,
              wr2, br2, wo2, g2, be2, mu2, va2,
              wr3, br3, wo3, g3, be3, mu3, va3,
              wl1, bl1, wl2, bl2)

    out = jax.block_until_ready(model3_pallas(A, X, M, params))
    ref = jax.block_until_ready(model3_reference(A, X, M, params))

    assert out.shape == (G, 1), out.shape
    assert jnp.allclose(out, ref, rtol=1e-4, atol=1e-4), (out, ref)
    print("KERNEL_OK")
</pallas_src>

<mosaic_0001>
module attributes {stable_mosaic.version = 11 : i64} {
  func.func @model3_kernel(%arg0: memref<16x16xf32, #tpu.memory_space<vmem>>, %arg1: memref<16x8xf32, #tpu.memory_space<vmem>>, %arg2: memref<2x16xf32, #tpu.memory_space<vmem>>, %arg3: memref<8x64xf32, #tpu.memory_space<vmem>>, %arg4: memref<64x64xf32, #tpu.memory_space<vmem>>, %arg5: memref<3x32xf32, #tpu.memory_space<vmem>>, %arg6: memref<32x16xf32, #tpu.memory_space<vmem>>, %arg7: memref<3x16xf32, #tpu.memory_space<vmem>>, %arg8: memref<2x128xf32, #tpu.memory_space<vmem>>) attributes {dimension_semantics = [], scalar_prefetch = 0 : i64, scratch_operands = 0 : i64, tpu.core_type = #tpu.core_type<tc>} {
    %c0 = arith.constant 0 : index
    %c0_0 = arith.constant 0 : index
    %0 = vector.load %arg0[%c0, %c0_0] : memref<16x16xf32, #tpu.memory_space<vmem>>, vector<16x16xf32>
    %c0_1 = arith.constant 0 : index
    %c0_2 = arith.constant 0 : index
    %1 = vector.load %arg1[%c0_1, %c0_2] : memref<16x8xf32, #tpu.memory_space<vmem>>, vector<16x8xf32>
    %c0_3 = arith.constant 0 : index
    %c0_4 = arith.constant 0 : index
    %2 = vector.load %arg5[%c0_3, %c0_4] : memref<3x32xf32, #tpu.memory_space<vmem>>, vector<3x32xf32>
    %c0_5 = arith.constant 0 : index
    %c0_6 = arith.constant 0 : index
    %3 = vector.load %arg4[%c0_5, %c0_6] : memref<64x64xf32, #tpu.memory_space<vmem>>, vector<64x64xf32>
    %c0_7 = arith.constant 0 : index
    %c0_8 = arith.constant 0 : index
    %4 = vector.load %arg3[%c0_7, %c0_8] : memref<8x64xf32, #tpu.memory_space<vmem>>, vector<8x64xf32>
    %5 = vector.extract_strided_slice %2 {offsets = [0, 0], sizes = [1, 32], strides = [1, 1]} : vector<3x32xf32> to vector<1x32xf32>
    %cst = arith.constant dense<0.000000e+00> : vector<16x64xf32>
    %6 = tpu.matmul %1, %4, %cst {dimension_numbers = #tpu.dot_dimension_numbers<[1], [0], [0], [1], [0, 0, 1, 1], [], []>} : vector<16x8xf32>, vector<8x64xf32>, vector<16x64xf32> -> vector<16x64xf32>
    %7 = vector.extract_strided_slice %6 {offsets = [0, 0], sizes = [16, 32], strides = [1, 1]} : vector<16x64xf32> to vector<16x32xf32>
    %cst_9 = arith.constant dense<0.000000e+00> : vector<16x32xf32>
    %8 = tpu.matmul %0, %7, %cst_9 {dimension_numbers = #tpu.dot_dimension_numbers<[1], [0], [0], [1], [0, 0, 1, 1], [], []>} : vector<16x16xf32>, vector<16x32xf32>, vector<16x32xf32> -> vector<16x32xf32>
    %9 = vector.extract_strided_slice %6 {offsets = [0, 32], sizes = [16, 32], strides = [1, 1]} : vector<16x64xf32> to vector<16x32xf32>
    %10 = arith.addf %8, %9 : vector<16x32xf32>
    %11 = vector.broadcast %5 : vector<1x32xf32> to vector<16x32xf32>
    %12 = arith.addf %10, %11 : vector<16x32xf32>
    %cst_10 = arith.constant 0.000000e+00 : f32
    %13 = vector.broadcast %cst_10 : f32 to vector<16x32xf32>
    %14 = arith.maximumf %12, %13 : vector<16x32xf32>
    %15 = vector.extract_strided_slice %3 {offsets = [0, 0], sizes = [32, 64], strides = [1, 1]} : vector<64x64xf32> to vector<32x64xf32>
    %16 = vector.extract_strided_slice %2 {offsets = [1, 0], sizes = [1, 32], strides = [1, 1]} : vector<3x32xf32> to vector<1x32xf32>
    %cst_11 = arith.constant dense<0.000000e+00> : vector<16x64xf32>
    %17 = tpu.matmul %14, %15, %cst_11 {dimension_numbers = #tpu.dot_dimension_numbers<[1], [0], [0], [1], [0, 0, 1, 1], [], []>} : vector<16x32xf32>, vector<32x64xf32>, vector<16x64xf32> -> vector<16x64xf32>
    %18 = vector.extract_strided_slice %17 {offsets = [0, 0], sizes = [16, 32], strides = [1, 1]} : vector<16x64xf32> to vector<16x32xf32>
    %cst_12 = arith.constant dense<0.000000e+00> : vector<16x32xf32>
    %19 = tpu.matmul %0, %18, %cst_12 {dimension_numbers = #tpu.dot_dimension_numbers<[1], [0], [0], [1], [0, 0, 1, 1], [], []>} : vector<16x16xf32>, vector<16x32xf32>, vector<16x32xf32> -> vector<16x32xf32>
    %20 = vector.extract_strided_slice %17 {offsets = [0, 32], sizes = [16, 32], strides = [1, 1]} : vector<16x64xf32> to vector<16x32xf32>
    %21 = arith.addf %19, %20 : vector<16x32xf32>
    %22 = vector.broadcast %16 : vector<1x32xf32> to vector<16x32xf32>
    %23 = arith.addf %21, %22 : vector<16x32xf32>
    %cst_13 = arith.constant 0.000000e+00 : f32
    %24 = vector.broadcast %cst_13 : f32 to vector<16x32xf32>
    %25 = arith.maximumf %23, %24 : vector<16x32xf32>
    %26 = vector.extract_strided_slice %3 {offsets = [32, 0], sizes = [32, 64], strides = [1, 1]} : vector<64x64xf32> to vector<32x64xf32>
    %27 = vector.extract_strided_slice %2 {offsets = [2, 0], sizes = [1, 32], strides = [1, 1]} : vector<3x32xf32> to vector<1x32xf32>
    %cst_14 = arith.constant dense<0.000000e+00> : vector<16x64xf32>
    %28 = tpu.matmul %25, %26, %cst_14 {dimension_numbers = #tpu.dot_dimension_numbers<[1], [0], [0], [1], [0, 0, 1, 1], [], []>} : vector<16x32xf32>, vector<32x64xf32>, vector<16x64xf32> -> vector<16x64xf32>
    %29 = vector.extract_strided_slice %28 {offsets = [0, 0], sizes = [16, 32], strides = [1, 1]} : vector<16x64xf32> to vector<16x32xf32>
    %cst_15 = arith.constant dense<0.000000e+00> : vector<16x32xf32>
    %30 = tpu.matmul %0, %29, %cst_15 {dimension_numbers = #tpu.dot_dimension_numbers<[1], [0], [0], [1], [0, 0, 1, 1], [], []>} : vector<16x16xf32>, vector<16x32xf32>, vector<16x32xf32> -> vector<16x32xf32>
    %31 = vector.extract_strided_slice %28 {offsets = [0, 32], sizes = [16, 32], strides = [1, 1]} : vector<16x64xf32> to vector<16x32xf32>
    %32 = arith.addf %30, %31 : vector<16x32xf32>
    %33 = vector.broadcast %27 : vector<1x32xf32> to vector<16x32xf32>
    %34 = arith.addf %32, %33 : vector<16x32xf32>
    %cst_16 = arith.constant 0.000000e+00 : f32
    %35 = vector.broadcast %cst_16 : f32 to vector<16x32xf32>
    %36 = arith.maximumf %34, %35 : vector<16x32xf32>
    %c0_17 = arith.constant 0 : index
    %c0_18 = arith.constant 0 : index
    %37 = vector.load %arg2[%c0_17, %c0_18] : memref<2x16xf32, #tpu.memory_space<vmem>>, vector<2x16xf32>
    %38 = vector.shape_cast %37 : vector<2x16xf32> to vector<2x16x1xf32>
    %cst_19 = arith.constant 5.000000e-01 : f32
    %39 = vector.broadcast %cst_19 : f32 to vector<2x16x1xf32>
    %40 = arith.cmpf ogt, %38, %39 : vector<2x16x1xf32>
    %41 = vector.shape_cast %36 : vector<16x32xf32> to vector<1x16x32xf32>
    %cst_20 = arith.constant -1.000000e+30 : f32
    %42 = vector.shape_cast %40 : vector<2x16x1xi1> to vector<2x16x1xi1>
    %43 = vector.broadcast %42 : vector<2x16x1xi1> to vector<2x16x32xi1>
    %44 = vector.shape_cast %41 : vector<1x16x32xf32> to vector<1x16x32xf32>
    %45 = vector.broadcast %44 : vector<1x16x32xf32> to vector<2x16x32xf32>
    %46 = vector.broadcast %cst_20 : f32 to vector<2x16x32xf32>
    %47 = arith.select %43, %45, %46 : vector<2x16x32xi1>, vector<2x16x32xf32>
    %cst_21 = arith.constant dense<0xFF800000> : vector<2x32xf32>
    %48 = vector.multi_reduction <maximumf>, %47, %cst_21 [1] : vector<2x16x32xf32> to vector<2x32xf32>
    %c0_22 = arith.constant 0 : index
    %c0_23 = arith.constant 0 : index
    %49 = vector.load %arg7[%c0_22, %c0_23] : memref<3x16xf32, #tpu.memory_space<vmem>>, vector<3x16xf32>
    %c0_24 = arith.constant 0 : index
    %c0_25 = arith.constant 0 : index
    %50 = vector.load %arg6[%c0_24, %c0_25] : memref<32x16xf32, #tpu.memory_space<vmem>>, vector<32x16xf32>
    %cst_26 = arith.constant dense<0.000000e+00> : vector<2x16xf32>
    %51 = tpu.matmul %48, %50, %cst_26 {dimension_numbers = #tpu.dot_dimension_numbers<[1], [0], [0], [1], [0, 0, 1, 1], [], []>} : vector<2x32xf32>, vector<32x16xf32>, vector<2x16xf32> -> vector<2x16xf32>
    %52 = vector.extract_strided_slice %49 {offsets = [0, 0], sizes = [1, 16], strides = [1, 1]} : vector<3x16xf32> to vector<1x16xf32>
    %53 = vector.broadcast %52 : vector<1x16xf32> to vector<2x16xf32>
    %54 = arith.addf %51, %53 : vector<2x16xf32>
    %cst_27 = arith.constant 0.000000e+00 : f32
    %55 = vector.broadcast %cst_27 : f32 to vector<2x16xf32>
    %56 = arith.maximumf %54, %55 : vector<2x16xf32>
    %57 = vector.extract_strided_slice %49 {offsets = [1, 0], sizes = [1, 16], strides = [1, 1]} : vector<3x16xf32> to vector<1x16xf32>
    %58 = vector.broadcast %57 : vector<1x16xf32> to vector<2x16xf32>
    %59 = arith.mulf %56, %58 : vector<2x16xf32>
    %cst_28 = arith.constant dense<0.000000e+00> : vector<2xf32>
    %60 = vector.multi_reduction <add>, %59, %cst_28 [1] : vector<2x16xf32> to vector<2xf32>
    %61 = vector.shape_cast %60 : vector<2xf32> to vector<2x1xf32>
    %62 = vector.extract_strided_slice %49 {offsets = [2, 0], sizes = [1, 1], strides = [1, 1]} : vector<3x16xf32> to vector<1x1xf32>
    %63 = vector.broadcast %62 : vector<1x1xf32> to vector<2x1xf32>
    %64 = arith.addf %61, %63 : vector<2x1xf32>
    %cst_29 = arith.constant 0.000000e+00 : f32
    %65 = vector.broadcast %cst_29 : f32 to vector<2x1xf32>
    %66 = arith.maximumf %64, %65 : vector<2x1xf32>
    %67 = vector.shape_cast %66 : vector<2x1xf32> to vector<2x1xf32>
    %68 = vector.broadcast %67 : vector<2x1xf32> to vector<2x128xf32>
    %c0_30 = arith.constant 0 : index
    %c0_31 = arith.constant 0 : index
    %69 = vector.load %arg8[%c0_30, %c0_31] : memref<2x128xf32, #tpu.memory_space<vmem>>, vector<2x128xf32>
    tpu.vector_store %arg8[%c0_30, %c0_31], %68 {strides = array<i32>} : memref<2x128xf32, #tpu.memory_space<vmem>>, vector<2x128xf32>,
    return
  }
}

</mosaic_0001>

<bundles_post_ra>
// kernel: tpu_custom_call.1
= control target key start
LH: loop header
LB: loop body
LE: loop exit
PB: predicated region body
PF: predicated region fallthrough
CT: control target
= control target key end

     0   :  { %13 = vsyncpa [#allocation3], 0  ;;  %s596_s0 = inlined_call_operand.vmem [shape: f32[16,16], index: 0, kind: input, shape index: {}]   ;;  %s597_s1 = inlined_call_operand.vmem [shape: f32[16,8], index: 1, kind: input, shape index: {}]   ;;  %s598_s2 = inlined_call_operand.vmem [shape: f32[2,16], index: 2, kind: input, shape index: {}]   ;;  %s599_s3 = inlined_call_operand.vmem [shape: f32[8,64], index: 3, kind: input, shape index: {}]   ;;  %s600_s4 = inlined_call_operand.hbm [shape: f32[64,64], index: 4, kind: input, shape index: {}]   ;;  %s601_s5 = inlined_call_operand.vmem [shape: f32[3,32], index: 5, kind: input, shape index: {}]   ;;  %s602_s6 = inlined_call_operand.vmem [shape: f32[32,16], index: 6, kind: input, shape index: {}]   ;;  %s603_s7 = inlined_call_operand.vmem [shape: f32[3,16], index: 7, kind: input, shape index: {}]   ;;  %s604_s8 = inlined_call_operand.hbm [shape: f32[2,128], index: 8, kind: output, shape index: {}]  }
   0x1   :  { %14 = vsyncpa [#allocation4], 0  ;;  %s27_s29 = sshll.u32 %s600_s4, 4  ;;  %s467_s30 = smov [#allocation2]   ;;  %s28_s29 = int_to_ptr.hbm [resolvable:$true] %s27_s29 }
   0x2   :  { %s29_s9 = sshll.u32 %s467_s30, 4  ;;  %s468_s10 = smov 128   ;;  %s30_s9 = int_to_ptr.vmem [resolvable:$true] %s29_s9 }
   0x3   :  { %s469_s11 = smov 8  }
   0x4   :  { %35 = dma.hbm_to_vmem [thread:$0]  %s28_s29, 1024, %s30_s9, [#allocation3], %s468_s10, %s468_s10, %s469_s11  }
   0x5   :  { %463 = dma.done.wait [#allocation3], 1024  }
   0x6   :  { %464 = vsyncadd [#allocation3], 4294966272  ;;  %vm60_vm0 = vcmask 64512   ;;  %v59_v0 = vld [vmem:[%s599_s3] sm:$0xff]  ;;  %v49_v2 = vld [vmem:[%s597_s1 + $0x8] sm:$0xff]  ;;  %s470_s17 = smov 96   ;;  %v266_v40 = vlaneseq }
   0x7   :  { %v48_v1 = vld [vmem:[%s597_s1] sm:$0xff]  ;;  %82 = vmatpush.msra.mxu0 %v59_v0  ;;  %vm98_vm1 = vcmask 130048   ;;  %v540_v6 = vld [vmem:[%s596_s0 + $0x8] sm:$0xff]  ;;  %v54_v7 = vld [vmem:[#allocation2 + $0x18] sm:$0xff]  ;;  %vm133_vm2 = vcmask 261120   ;;  %vm333_vm7 = vcmask 1041409  }
   0x8   :  { %390 = vmatmul.msk.f32.vlgmr.msra.gmra.mxu0 %vm60_vm0, %v48_v1  ;;  %v535_v5 = vld [vmem:[%s596_s0] sm:$0xff]  ;;  %v53_v8 = vld [vmem:[#allocation2 + $0x10] sm:$0xff]  ;;  %v52_v9 = vld [vmem:[#allocation2 + $0x8] sm:$0xff]  ;;  %v267_v41 = vshrl.u32 %v266_v40, 7  ;;  %vm360_vm8 = vcmask 123904   ;;  %s472_s30 = smov [#allocation5]  }
   0x9   :  { %v51_v10 = vld [vmem:[#allocation2] sm:$0xff]  ;;  %v58_v25 = vld [vmem:[#allocation2 + $0x38] sm:$0xff]  ;;  %v57_v26 = vld [vmem:[#allocation2 + $0x30] sm:$0xff]  ;;  %s378_s9 = sshll.u32 %s472_s30, 4  ;;  %s380_s11 = sshll.u32 %s604_s8, 4  ;;  %s379_s9 = int_to_ptr.vmem [resolvable:$true] %s378_s9  ;;  %s381_s11 = int_to_ptr.hbm [resolvable:$true] %s380_s11 }
   0xa   :  { %v549_v11 = vld [vmem:[%s601_s5] sm:$0x7]  ;;  %217 = vmatpush.msrb.mxu0 %v58_v25  ;;  %v56_v27 = vld [vmem:[#allocation2 + $0x28] sm:$0xff]  ;;  %v274_v42 = vadd.s32 8, %v267_v41  ;;  %411 = vset.pattern.permute.xlu0 %v267_v41  ;;  %v329_v49 = vld [vmem:[%s602_s6 + $0x18] sm:$0xff] }
   0xb   :  { %v128_v13 = vperm.slane %v549_v11, 0  ;;  %v55_v28 = vld [vmem:[#allocation2 + $0x20] sm:$0xff]  ;;  %v194_v30 = vperm.slane %v549_v11, 1  ;;  %413 = vset.pattern.permute.xlu2 %v267_v41  ;;  %v328_v50 = vld [vmem:[%s602_s6 + $0x10] sm:$0xff]  ;;  %v327_v51 = vld [vmem:[%s602_s6 + $0x8] sm:$0xff]  ;;  %v259_v56 = vperm.slane %v549_v11, 2 }
   0xc   :  { %218 = vmatpush.msrb.mxu0 %v57_v26  ;;  %412 = vset.pattern.permute.xlu1 %v274_v42  ;;  %v264_v43 = vld [vmem:[%s598_s2] sm:$0x3] }
   0xd   :  { %v265_v44 = vperm.slane %v264_v43, 0  ;;  %v278_v45 = vperm.slane %v264_v43, 1  ;;  %v326_v52 = vld [vmem:[%s602_s6] sm:$0xff] }
   0xe   :  { %219 = vmatpush.msrb.mxu0 %v56_v27  ;;  %v325_v26 = vld [vmem:[%s603_s7] sm:$0x7] }
   0xf   :  { %v330_v27 = vperm.slane %v325_v26, 0 }
  0x10   :  { %391 = vmatmul.msk.f32.gmra.mxu0 %vm60_vm0, %v49_v2 }
  0x11   :  { %220 = vmatpush.msrb.mxu0 %v55_v28 }
  0x85   :  { %v84_v3 = vpop.f32.mrf.mxu0 }
  0x86   :  { %92 = vrot.lane.b32.xlu0 %v84_v3, %s470_s17 }
  0x8d   :  { %v87_v4 = vpop.f32.mrf.mxu0 }
  0x8e   :  { %94 = vrot.lane.b32.xlu0 %v87_v4, %s470_s17  ;;  %119 = vmatpush.msra.mxu1 %v87_v4 }
  0x8f   :  { %403 = vmatpush.msra.mxu2 %v87_v4 }
  0x90   :  { %120 = vmatpush.msra.mxu1 %v84_v3 }
  0x91   :  { %404 = vmatpush.msra.mxu2 %v84_v3  ;;  %392 = vmatmul.msk.f32.vlgmr.msra.gmra.mxu1 %vm98_vm1, %v535_v5 }
  0x92   :  { %393 = vmatmul.msk.f32.vlgmr.msra.gmra.mxu2 %vm98_vm1, %v540_v6 }
  0x93   :  { %152 = vmatpush.msrb.mxu2 %v54_v7 }
  0x95   :  { %153 = vmatpush.msrb.mxu2 %v53_v8 }
  0x96   :  { %270 = vperm.xlu0 %411, %v265_v44  }
  0x97   :  { %154 = vmatpush.msrb.mxu2 %v52_v9 }
  0x99   :  { %155 = vmatpush.msrb.mxu2 %v51_v10 }
  0xf8   :  { %v93_v12 = vpop.permute.xlu0 %92 }
 0x100   :  { %v95_v18 = vpop.permute.xlu0 %94 }
 0x108   :  { %v271_v59 = vpop.permute.xlu0 %270 }
 0x109   :  { %vm291_vm3 = vcmp.gt.f32.partialorder %v271_v59, 0.5 }
 0x10e   :  { %v122_v14 = vpop.f32.mrf.mxu1 }
 0x10f   :  { %v123_v15 = vadd.f32 %v122_v14, %v93_v12 }
 0x111   :  { %v129_v16 = vadd.f32 %v128_v13, %v123_v15 }
 0x113   :  { %v131_v17 = vmax.f32 %v129_v16, 0.0 }
 0x115   :  { %v125_v19 = vpop.f32.mrf.mxu2  ;;  %394 = vmatmul.msk.f32.vlgmr.msrb.gmra.mxu2 %vm133_vm2, %v131_v17 }
 0x116   :  { %v126_v20 = vadd.f32 %v125_v19, %v95_v18 }
 0x118   :  { %v130_v21 = vadd.f32 %v128_v13, %v126_v20 }
 0x11a   :  { %v132_v22 = vmax.f32 %v130_v21, 0.0 }
 0x11d   :  { %395 = vmatmul.msk.f32.gmra.mxu2 %vm133_vm2, %v132_v22 }
 0x198   :  { %v157_v23 = vpop.f32.mrf.mxu2 }
 0x199   :  { %165 = vrot.lane.b32.xlu1 %v157_v23, %s470_s17 }
 0x1a0   :  { %v160_v24 = vpop.f32.mrf.mxu2 }
 0x1a1   :  { %167 = vrot.lane.b32.xlu1 %v160_v24, %s470_s17  ;;  %185 = vmatpush.msra.mxu3 %v160_v24 }
 0x1a3   :  { %186 = vmatpush.msra.mxu3 %v157_v23 }
 0x1a4   :  { %396 = vmatmul.msk.f32.vlgmr.msra.gmra.mxu3 %vm98_vm1, %v535_v5 }
 0x1a5   :  { %349 = vmatpush.msrb.mxu3 %v329_v49 }
 0x1a7   :  { %350 = vmatpush.msrb.mxu3 %v328_v50 }
 0x1a9   :  { %276 = vperm.xlu1 %412, %v265_v44   ;;  %351 = vmatpush.msrb.mxu3 %v327_v51 }
 0x1ab   :  { %352 = vmatpush.msrb.mxu3 %v326_v52 }
 0x1ac   :  { %397 = vmatmul.msk.f32.gmra.mxu3 %vm98_vm1, %v540_v6 }
 0x1b1   :  { %289 = vperm.xlu1 %412, %v278_v45  }
 0x20b   :  { %v166_v29 = vpop.permute.xlu1 %165 }
 0x213   :  { %v168_v35 = vpop.permute.xlu1 %167 }
 0x21b   :  { %v277_v57 = vpop.permute.xlu1 %276 }
 0x21c   :  { %vm292_vm5 = vcmp.gt.f32.partialorder %v277_v57, 0.5 }
 0x223   :  { %v290_v1 = vpop.permute.xlu1 %289 }
 0x224   :  { %vm294_vm6 = vcmp.gt.f32.partialorder %v290_v1, 0.5 }
 0x227   :  { %v188_v31 = vpop.f32.mrf.mxu3 }
 0x228   :  { %v189_v32 = vadd.f32 %v188_v31, %v166_v29 }
 0x22a   :  { %v195_v33 = vadd.f32 %v194_v30, %v189_v32 }
 0x22c   :  { %v197_v34 = vmax.f32 %v195_v33, 0.0 }
 0x22e   :  { %398 = vmatmul.msk.f32.vlgmr.msrb.gmra.mxu0 %vm133_vm2, %v197_v34  ;;  %v471_v34 = vmov 0  }
 0x22f   :  { %v191_v36 = vpop.f32.mrf.mxu3  ;;  %414 = vset.pattern.permute.xlu0 %v471_v34 }
 0x230   :  { %v192_v37 = vadd.f32 %v191_v36, %v168_v35  ;;  %v364_v35 = vperm.slane %v325_v26, 2 }
 0x232   :  { %v196_v38 = vadd.f32 %v194_v30, %v192_v37  ;;  %v358_v30 = vperm.slane %v325_v26, 1 }
 0x234   :  { %v198_v39 = vmax.f32 %v196_v38, 0.0 }
 0x236   :  { %399 = vmatmul.msk.f32.gmra.mxu0 %vm133_vm2, %v198_v39 }
 0x2ab   :  { %v222_v46 = vpop.f32.mrf.mxu0 }
 0x2ac   :  { %230 = vrot.lane.b32.xlu2 %v222_v46, %s470_s17 }
 0x2b3   :  { %v225_v47 = vpop.f32.mrf.mxu0 }
 0x2b4   :  { %232 = vrot.lane.b32.xlu2 %v225_v47, %s470_s17  ;;  %250 = vmatpush.msrb.mxu1 %v225_v47 }
 0x2b6   :  { %251 = vmatpush.msrb.mxu1 %v222_v46 }
 0x2b7   :  { %400 = vmatmul.msk.f32.vlgmr.msrb.gmra.mxu1 %vm98_vm1, %v535_v5 }
 0x2bc   :  { %283 = vperm.xlu2 %413, %v278_v45  }
 0x2bf   :  { %401 = vmatmul.msk.f32.gmra.mxu1 %vm98_vm1, %v540_v6 }
 0x306   :  { %v231_v48 = vpop.permute.xlu2 %230 }
 0x30e   :  { %v233_v53 = vpop.permute.xlu2 %232 }
 0x316   :  { %v284_v60 = vpop.permute.xlu2 %283 }
 0x317   :  { %vm293_vm4 = vcmp.gt.f32.partialorder %v284_v60, 0.5 }
 0x334   :  { %v253_v54 = vpop.f32.mrf.mxu1 }
 0x335   :  { %v254_v55 = vadd.f32 %v253_v54, %v231_v48 }
 0x337   :  { %v260_v58 = vadd.f32 %v259_v56, %v254_v55 }
 0x339   :  { %v262_v62 = vmax.f32 %v260_v58, 0.0 }
 0x33b   :  { %v303_v2 = vsel %vm291_vm3, %v262_v62, -1e+30  ;;  %v305_v3 = vsel %vm293_vm4, %v262_v62, -1e+30 }
 0x33c   :  { %v256_v61 = vpop.f32.mrf.mxu1  ;;  %v307_v7 = vsel %vm133_vm2, %v303_v2, -inf  ;;  %v316_v8 = vsel %vm133_vm2, %v305_v3, -inf }
 0x33d   :  { %v257_v63 = vadd.f32 %v256_v61, %v233_v53 }
 0x33f   :  { %v261_v0 = vadd.f32 %v259_v56, %v257_v63 }
 0x341   :  { %v263_v4 = vmax.f32 %v261_v0, 0.0 }
 0x343   :  { %v304_v5 = vsel %vm292_vm5, %v263_v4, -1e+30  ;;  %v306_v6 = vsel %vm294_vm6, %v263_v4, -1e+30 }
 0x344   :  { %v308_v9 = vsel %vm133_vm2, %v304_v5, -inf  ;;  %v317_v10 = vsel %vm133_vm2, %v306_v6, -inf }
 0x345   :  { %v309_v11 = vmax.f32 %v307_v7, %v308_v9  ;;  %v318_v12 = vmax.f32 %v316_v8, %v317_v10 }
 0x347   :  { %v310_v13 = vrot.slane %v309_v11, 4  ;;  %v319_v14 = vrot.slane %v318_v12, 4 }
 0x349   :  { %v311_v15 = vmax.f32 %v309_v11, %v310_v13  ;;  %v320_v16 = vmax.f32 %v318_v12, %v319_v14 }
 0x34b   :  { %v312_v17 = vrot.slane %v311_v15, 2  ;;  %v321_v18 = vrot.slane %v320_v16, 2 }
 0x34d   :  { %v322_v19 = vmax.f32 %v320_v16, %v321_v18  ;;  %v313_v20 = vmax.f32 %v311_v15, %v312_v17 }
 0x34f   :  { %v323_v21 = vrot.slane %v322_v19, 1  ;;  %v314_v22 = vrot.slane %v313_v20, 1 }
 0x351   :  { %v315_v23 = vmax.f32 %v313_v20, %v314_v22  ;;  %v324_v24 = vmax.f32 %v322_v19, %v323_v21 }
 0x353   :  { %v334_v25 = vsel %vm333_vm7, %v324_v24, %v315_v23 }
 0x354   :  { %402 = vmatmul.msk.f32.vlgmr.msrb.gmra.mxu3 %vm133_vm2, %v334_v25 }
 0x3d7   :  { %v354_v28 = vpop.f32.mrf.mxu3 }
 0x3d8   :  { %v355_v29 = vadd.f32 %v354_v28, %v330_v27 }
 0x3da   :  { %v357_v31 = vmax.f32 %v355_v29, 0.0 }
 0x3dc   :  { %v359_v32 = vmul.f32 %v358_v30, %v357_v31 }
 0x3de   :  { %v361_v33 = vsel %vm360_vm8, %v359_v32, 0.0 }
 0x3df   :  { %362 = vadd.xlane.f32.xlu2 %v361_v33 }
 0x452   :  { %v363_v36 = vpop.xlane.xlu2 %362 }
 0x453   :  { %v365_v37 = vadd.f32 %v364_v35, %v363_v36 }
 0x455   :  { %v366_v38 = vmax.f32 %v365_v37, 0.0 }
 0x457   :  { %369 = vperm.xlu0 %414, %v366_v38  }
 0x4c9   :  { %v370_v39 = vpop.permute.xlu0 %369 }
 0x4ca   :  { %372 = vst [vmem:[#allocation5] sm:$0x3] %v370_v39 }
 0x4cb   :  { %383 = dma.vmem_to_hbm [thread:$0]  %s379_s9, 32, %s381_s11, [#allocation4]  }
 0x4cc   :  { %465 = dma.done.wait [#allocation4], 32  }
 0x4cd   :  { %466 = vsyncadd [#allocation4], 4294967264 }
 0x4ce   :  { %388 = vsyncpa [#allocation3], 1 }
 0x4cf   :  { %389 = vsyncpa [#allocation4], 1 }

</bundles_post_ra>
